<compile_context>
chip_gen: v7x
topology: tpu7x:2x2x1
jax: 0.10.0
libtpu: 0.0.40
codegen_flags: <defaults>
</compile_context>

<pallas_src>
import jax
import jax.numpy as jnp
from jax.experimental import pallas as pl
from jax.experimental.pallas import tpu as pltpu


def encoder_kernel(self_ref, mask_ref, feat_ref, wsT_ref, wnT_ref, out_ref,
                   neigh_acc, deg_acc):
    v = pl.program_id(1)

    @pl.when(v == 0)
    def _init():
        neigh_acc[...] = jnp.zeros_like(neigh_acc)
        deg_acc[...] = jnp.zeros_like(deg_acc)

    mask = mask_ref[...]                                            # [tn, tv]
    # Degree reduction rides along with the mask tile already resident in VMEM
    # (XLU slot, free next to the MXU work below).
    deg_acc[...] += jnp.sum(mask, axis=1, keepdims=True)            # [tn, 1]
    neigh_acc[...] += jnp.dot(mask, feat_ref[...],
                              preferred_element_type=jnp.float32)   # [tn, F]

    @pl.when(v == pl.num_programs(1) - 1)
    def _finalize():
        deg = jnp.maximum(deg_acc[...], 1.0)
        # Exact division keeps the tight f32 tolerance; switch to
        # pl.reciprocal(deg, approx=True) (EUP slot, ~free) with bf16/looser
        # tolerances.
        neigh = neigh_acc[...] / deg                                 # [tn, F]
        z = jnp.dot(self_ref[...], wsT_ref[...],
                    preferred_element_type=jnp.float32)              # [tn, Ep]
        z = z + jnp.dot(neigh, wnT_ref[...],
                        preferred_element_type=jnp.float32)
        out_ref[...] = jnp.maximum(z, 0.0)                           # lane-dense on E_pad


def _round_up(x, m):
    return ((x + m - 1) // m) * m


def _pick_tile(dim, max_tile, align):
    """Largest tile <= max_tile that is a multiple of `align` and divides `dim`.
    Falls back to the full dim (always a legal full-extent block)."""
    if dim <= max_tile:
        return dim
    t = (max_tile // align) * align
    while t >= align:
        if dim % t == 0:
            return t
        t -= align
    return dim


def _choose_tv(v_pad, f, tn, e_pad, budget_bytes=24 * 1024 * 1024):
    """Pick the V-tile so all (double-buffered) VMEM tiles stay within budget."""
    # Bytes that scale with tv (both pipelined with 2 buffers):
    #   features tile [tv, F] and mask tile [tn, tv], f32.
    per_tv = 2 * 4 * (f + tn)
    # Roughly-fixed VMEM: self tile (2x), the two weight tiles (2x each, fetched
    # once but still double-buffer allocated), output tile (2x), scratch (1x).
    fixed = (2 * 4 * tn * f                 # self_feats
             + 2 * 2 * 4 * f * e_pad        # w_self_T + w_neigh_T
             + 2 * 4 * tn * e_pad           # output
             + 4 * tn * f + 4 * tn * 128)   # accumulators (deg lane-padded)
    avail = max(budget_bytes - fixed, 128 * per_tv)
    cap = max(128, min(2048, (avail // per_tv) // 128 * 128))
    return _pick_tile(v_pad, cap, 128)


def encoder_forward(self_feats, adj_mask, features, weight):
    n, f = self_feats.shape
    v = features.shape[0]
    e = weight.shape[0]
    assert adj_mask.shape == (n, v)
    assert weight.shape == (e, 2 * f)

    # Host-side weight split + transpose + E padding to a multiple of 128:
    # removes the in-kernel cross-lane slice and makes every output store
    # unmasked / lane-dense.
    e_pad = _round_up(e, 128)
    w_self_t = jnp.transpose(weight[:, :f])     # [F, E]
    w_neigh_t = jnp.transpose(weight[:, f:])    # [F, E]
    if e_pad != e:
        pad_e = ((0, 0), (0, e_pad - e))
        w_self_t = jnp.pad(w_self_t, pad_e)
        w_neigh_t = jnp.pad(w_neigh_t, pad_e)

    # Zero-pad N (sublane) and V (lane / reduction) so blocks divide each axis
    # exactly.  Padded mask columns / feature rows are zero -> exact no-op for
    # neigh and degree; padded batch rows are sliced off below.
    n_pad = _round_up(n, 8)
    v_pad = _round_up(v, 128)
    if n_pad != n:
        self_feats = jnp.pad(self_feats, ((0, n_pad - n), (0, 0)))
    if n_pad != n or v_pad != v:
        adj_mask = jnp.pad(adj_mask, ((0, n_pad - n), (0, v_pad - v)))
    if v_pad != v:
        features = jnp.pad(features, ((0, v_pad - v), (0, 0)))

    tn = _pick_tile(n_pad, 128, 8)
    tv = _choose_tv(v_pad, f, tn, e_pad)
    grid = (n_pad // tn, v_pad // tv)

    kernel = pl.pallas_call(
        encoder_kernel,
        out_shape=jax.ShapeDtypeStruct((n_pad, e_pad), jnp.float32),
        grid_spec=pltpu.PrefetchScalarGridSpec(
            num_scalar_prefetch=0,
            grid=grid,
            in_specs=[
                pl.BlockSpec((tn, f), lambda i, j: (i, 0)),       # self_feats
                pl.BlockSpec((tn, tv), lambda i, j: (i, j)),      # adj_mask
                pl.BlockSpec((tv, f), lambda i, j: (j, 0)),       # features
                pl.BlockSpec((f, e_pad), lambda i, j: (0, 0)),    # w_self^T (fetched once)
                pl.BlockSpec((f, e_pad), lambda i, j: (0, 0)),    # w_neigh^T (fetched once)
            ],
            out_specs=pl.BlockSpec((tn, e_pad), lambda i, j: (i, 0)),
            scratch_shapes=[
                pltpu.VMEM((tn, f), jnp.float32),   # neigh accumulator
                pltpu.VMEM((tn, 1), jnp.float32),   # degree accumulator
            ],
        ),
        compiler_params=pltpu.CompilerParams(
            dimension_semantics=("parallel", "arbitrary"),
            vmem_limit_bytes=32 * 1024 * 1024,
        ),
    )
    out_ne = kernel(self_feats, adj_mask, features, w_self_t, w_neigh_t)  # [Np, Ep]
    # Module returns relu(W @ combined.T) with shape [E, N]; slice + relabel.
    return out_ne[:n, :e].T


def encoder_reference(self_feats, adj_mask, features, weight):
    deg = jnp.maximum(adj_mask.sum(axis=1, keepdims=True), 1.0)
    neigh = (adj_mask @ features) / deg
    combined = jnp.concatenate([self_feats, neigh], axis=1)
    return jnp.maximum(weight @ combined.T, 0.0)


if __name__ == "__main__":
    key = jax.random.PRNGKey(0)
    k_feat, k_adj, k_w, k_nodes = jax.random.split(key, 4)

    num_nodes = 64      # V : total nodes (feature table rows)
    feat_dim = 32       # F
    embed_dim = 32      # E
    batch = 8           # N : len(nodes)
    num_sample = 10

    # deterministic "nn.Embedding"-style feature table
    features = jax.random.normal(k_feat, (num_nodes, feat_dim), dtype=jnp.float32)

    # deterministic adjacency: each node gets <= num_sample neighbors, so the
    # aggregator's random neighbor sampling is a no-op.
    # TODO(synk): torch's random.sample() neighbor subsampling is nondeterministic;
    # here each node already has <= num_sample neighbors so sampling is identity.
    adj_full = (jax.random.uniform(k_adj, (num_nodes, num_nodes)) < 0.12).astype(jnp.float32)
    adj_full = adj_full * (1.0 - jnp.eye(num_nodes, dtype=jnp.float32))  # no self loops (gcn=False)
    csum = jnp.cumsum(adj_full, axis=1)
    adj_full = adj_full * (csum <= num_sample).astype(jnp.float32)
    fallback = jnp.roll(jnp.eye(num_nodes, dtype=jnp.float32), 1, axis=1)
    has_nb = (adj_full.sum(axis=1, keepdims=True) > 0).astype(jnp.float32)
    adj_full = adj_full * has_nb + fallback * (1.0 - has_nb)

    # Encoder.weight: [embed_dim, 2*feat_dim] (gcn=False), xavier_uniform
    fan_in, fan_out = 2 * feat_dim, embed_dim
    bound = (6.0 / (fan_in + fan_out)) ** 0.5
    weight = jax.random.uniform(k_w, (embed_dim, 2 * feat_dim),
                                minval=-bound, maxval=bound, dtype=jnp.float32)

    # batch of node indices
    nodes = jax.random.randint(k_nodes, (batch,), 0, num_nodes)

    # JAX glue: gather self features and adjacency-mask rows for the batch
    self_feats = jnp.take(features, nodes, axis=0)          # [N, F]
    adj_mask = jnp.take(adj_full, nodes, axis=0)            # [N, V]

    out = encoder_forward(self_feats, adj_mask, features, weight)
    out = jax.block_until_ready(out)

    ref = encoder_reference(self_feats, adj_mask, features, weight)
    assert out.shape == (embed_dim, batch)
    assert jnp.allclose(out, ref, atol=1e-4, rtol=1e-4)

    print("KERNEL_OK")
</pallas_src>

<mosaic_0001>
module attributes {stable_mosaic.version = 11 : i64} {
  func.func @encoder_kernel(%arg0: i32, %arg1: i32, %arg2: memref<8x32xf32, #tpu.memory_space<vmem>>, %arg3: memref<8x128xf32, #tpu.memory_space<vmem>>, %arg4: memref<128x32xf32, #tpu.memory_space<vmem>>, %arg5: memref<32x128xf32, #tpu.memory_space<vmem>>, %arg6: memref<32x128xf32, #tpu.memory_space<vmem>>, %arg7: memref<8x128xf32, #tpu.memory_space<vmem>>, %arg8: memref<8x32xf32, #tpu.memory_space<vmem>>, %arg9: memref<8x1xf32, #tpu.memory_space<vmem>>) attributes {dimension_semantics = [#tpu.dimension_semantics<parallel>, #tpu.dimension_semantics<arbitrary>], iteration_bounds = array<i64: 1, 1>, scalar_prefetch = 0 : i64, scratch_operands = 2 : i64, tpu.core_type = #tpu.core_type<tc>, window_params = [{transform_indices = @transform_0, window_bounds = array<i64: 8, 32>}, {transform_indices = @transform_1, window_bounds = array<i64: 8, 128>}, {transform_indices = @transform_2, window_bounds = array<i64: 128, 32>}, {pipeline_mode = #tpu.pipeline_mode<synchronous>, transform_indices = @transform_3, window_bounds = array<i64: 32, 128>}, {pipeline_mode = #tpu.pipeline_mode<synchronous>, transform_indices = @transform_4, window_bounds = array<i64: 32, 128>}, {transform_indices = @transform_5, window_bounds = array<i64: 8, 128>}]} {
    %c0_i32 = arith.constant 0 : i32
    %0 = arith.cmpi eq, %arg1, %c0_i32 : i32
    %1 = arith.extui %0 : i1 to i32
    %c0_i32_0 = arith.constant 0 : i32
    %2 = arith.cmpi ne, %1, %c0_i32_0 : i32
    scf.if %2 {
      %cst_15 = arith.constant 0.000000e+00 : f32
      %17 = vector.broadcast %cst_15 : f32 to vector<8x32xf32>
      %c0_16 = arith.constant 0 : index
      %c0_17 = arith.constant 0 : index
      %18 = vector.load %arg8[%c0_16, %c0_17] : memref<8x32xf32, #tpu.memory_space<vmem>>, vector<8x32xf32>
      tpu.vector_store %arg8[%c0_16, %c0_17], %17 {strides = array<i32>} : memref<8x32xf32, #tpu.memory_space<vmem>>, vector<8x32xf32>,
      %cst_18 = arith.constant 0.000000e+00 : f32
      %19 = vector.broadcast %cst_18 : f32 to vector<8x1xf32>
      %c0_19 = arith.constant 0 : index
      %c0_20 = arith.constant 0 : index
      %20 = vector.load %arg9[%c0_19, %c0_20] : memref<8x1xf32, #tpu.memory_space<vmem>>, vector<8x1xf32>
      tpu.vector_store %arg9[%c0_19, %c0_20], %19 {strides = array<i32>} : memref<8x1xf32, #tpu.memory_space<vmem>>, vector<8x1xf32>,
    } else {
    }
    %c0 = arith.constant 0 : index
    %c0_1 = arith.constant 0 : index
    %3 = vector.load %arg3[%c0, %c0_1] : memref<8x128xf32, #tpu.memory_space<vmem>>, vector<8x128xf32>
    %c0_2 = arith.constant 0 : index
    %c0_3 = arith.constant 0 : index
    %4 = vector.load %arg9[%c0_2, %c0_3] : memref<8x1xf32, #tpu.memory_space<vmem>>, vector<8x1xf32>
    %cst = arith.constant dense<0.000000e+00> : vector<8xf32>
    %5 = vector.multi_reduction <add>, %3, %cst [1] : vector<8x128xf32> to vector<8xf32>
    %6 = vector.shape_cast %5 : vector<8xf32> to vector<8x1xf32>
    %7 = arith.addf %4, %6 : vector<8x1xf32>
    %c0_4 = arith.constant 0 : index
    %c0_5 = arith.constant 0 : index
    %8 = vector.load %arg9[%c0_4, %c0_5] : memref<8x1xf32, #tpu.memory_space<vmem>>, vector<8x1xf32>
    tpu.vector_store %arg9[%c0_4, %c0_5], %7 {strides = array<i32>} : memref<8x1xf32, #tpu.memory_space<vmem>>, vector<8x1xf32>,
    %c0_6 = arith.constant 0 : index
    %c0_7 = arith.constant 0 : index
    %9 = vector.load %arg8[%c0_6, %c0_7] : memref<8x32xf32, #tpu.memory_space<vmem>>, vector<8x32xf32>
    %c0_8 = arith.constant 0 : index
    %c0_9 = arith.constant 0 : index
    %10 = vector.load %arg4[%c0_8, %c0_9] : memref<128x32xf32, #tpu.memory_space<vmem>>, vector<128x32xf32>
    %cst_10 = arith.constant dense<0.000000e+00> : vector<8x32xf32>
    %11 = tpu.matmul %3, %10, %cst_10 {dimension_numbers = #tpu.dot_dimension_numbers<[1], [0], [0], [1], [0, 0, 1, 1], [], []>} : vector<8x128xf32>, vector<128x32xf32>, vector<8x32xf32> -> vector<8x32xf32>
    %12 = arith.addf %9, %11 : vector<8x32xf32>
    %c0_11 = arith.constant 0 : index
    %c0_12 = arith.constant 0 : index
    %13 = vector.load %arg8[%c0_11, %c0_12] : memref<8x32xf32, #tpu.memory_space<vmem>>, vector<8x32xf32>
    tpu.vector_store %arg8[%c0_11, %c0_12], %12 {strides = array<i32>} : memref<8x32xf32, #tpu.memory_space<vmem>>, vector<8x32xf32>,
    %c0_i32_13 = arith.constant 0 : i32
    %14 = arith.cmpi eq, %arg1, %c0_i32_13 : i32
    %15 = arith.extui %14 : i1 to i32
    %c0_i32_14 = arith.constant 0 : i32
    %16 = arith.cmpi ne, %15, %c0_i32_14 : i32
    scf.if %16 {
      %c0_15 = arith.constant 0 : index
      %c0_16 = arith.constant 0 : index
      %17 = vector.load %arg9[%c0_15, %c0_16] : memref<8x1xf32, #tpu.memory_space<vmem>>, vector<8x1xf32>
      %cst_17 = arith.constant 1.000000e+00 : f32
      %18 = vector.broadcast %cst_17 : f32 to vector<8x1xf32>
      %19 = arith.maximumf %17, %18 : vector<8x1xf32>
      %c0_18 = arith.constant 0 : index
      %c0_19 = arith.constant 0 : index
      %20 = vector.load %arg8[%c0_18, %c0_19] : memref<8x32xf32, #tpu.memory_space<vmem>>, vector<8x32xf32>
      %21 = vector.broadcast %19 : vector<8x1xf32> to vector<8x32xf32>
      %22 = arith.divf %20, %21 : vector<8x32xf32>
      %c0_20 = arith.constant 0 : index
      %c0_21 = arith.constant 0 : index
      %23 = vector.load %arg2[%c0_20, %c0_21] : memref<8x32xf32, #tpu.memory_space<vmem>>, vector<8x32xf32>
      %c0_22 = arith.constant 0 : index
      %c0_23 = arith.constant 0 : index
      %24 = vector.load %arg5[%c0_22, %c0_23] : memref<32x128xf32, #tpu.memory_space<vmem>>, vector<32x128xf32>
      %cst_24 = arith.constant dense<0.000000e+00> : vector<8x128xf32>
      %25 = tpu.matmul %23, %24, %cst_24 {dimension_numbers = #tpu.dot_dimension_numbers<[1], [0], [0], [1], [0, 0, 1, 1], [], []>} : vector<8x32xf32>, vector<32x128xf32>, vector<8x128xf32> -> vector<8x128xf32>
      %c0_25 = arith.constant 0 : index
      %c0_26 = arith.constant 0 : index
      %26 = vector.load %arg6[%c0_25, %c0_26] : memref<32x128xf32, #tpu.memory_space<vmem>>, vector<32x128xf32>
      %cst_27 = arith.constant dense<0.000000e+00> : vector<8x128xf32>
      %27 = tpu.matmul %22, %26, %cst_27 {dimension_numbers = #tpu.dot_dimension_numbers<[1], [0], [0], [1], [0, 0, 1, 1], [], []>} : vector<8x32xf32>, vector<32x128xf32>, vector<8x128xf32> -> vector<8x128xf32>
      %28 = arith.addf %25, %27 : vector<8x128xf32>
      %cst_28 = arith.constant 0.000000e+00 : f32
      %29 = vector.broadcast %cst_28 : f32 to vector<8x128xf32>
      %30 = arith.maximumf %28, %29 : vector<8x128xf32>
      %c0_29 = arith.constant 0 : index
      %c0_30 = arith.constant 0 : index
      %31 = vector.load %arg7[%c0_29, %c0_30] : memref<8x128xf32, #tpu.memory_space<vmem>>, vector<8x128xf32>
      tpu.vector_store %arg7[%c0_29, %c0_30], %30 {strides = array<i32>} : memref<8x128xf32, #tpu.memory_space<vmem>>, vector<8x128xf32>,
    } else {
    }
    return
  }
  func.func @transform_0(%arg0: i32, %arg1: i32) -> (i32, i32) {
    %c0_i32 = arith.constant 0 : i32
    %c0_i32_0 = arith.constant 0 : i32
    return %arg0, %c0_i32 : i32, i32
  }
  func.func @transform_1(%arg0: i32, %arg1: i32) -> (i32, i32) {
    %c0_i32 = arith.constant 0 : i32
    return %arg0, %arg1 : i32, i32
  }
  func.func @transform_2(%arg0: i32, %arg1: i32) -> (i32, i32) {
    %c0_i32 = arith.constant 0 : i32
    %c0_i32_0 = arith.constant 0 : i32
    return %arg1, %c0_i32 : i32, i32
  }
  func.func @transform_3(%arg0: i32, %arg1: i32) -> (i32, i32) {
    %c0_i32 = arith.constant 0 : i32
    %c0_i32_0 = arith.constant 0 : i32
    %c0_i32_1 = arith.constant 0 : i32
    return %c0_i32, %c0_i32_0 : i32, i32
  }
  func.func @transform_4(%arg0: i32, %arg1: i32) -> (i32, i32) {
    %c0_i32 = arith.constant 0 : i32
    %c0_i32_0 = arith.constant 0 : i32
    %c0_i32_1 = arith.constant 0 : i32
    return %c0_i32, %c0_i32_0 : i32, i32
  }
  func.func @transform_5(%arg0: i32, %arg1: i32) -> (i32, i32) {
    %c0_i32 = arith.constant 0 : i32
    %c0_i32_0 = arith.constant 0 : i32
    return %arg0, %c0_i32 : i32, i32
  }
}

</mosaic_0001>

<bundles_post_ra>
// kernel: tpu_custom_call.1
= control target key start
LH: loop header
LB: loop body
LE: loop exit
PB: predicated region body
PF: predicated region fallthrough
CT: control target
= control target key end

     0   :  { %v466_v3 = vmov 0.0|0.0   ;;  %vm467_vm0 = vmmov 0   ;;  %v468_v7 = vmov 0.0   ;;  %s617_s0 = inlined_call_operand.vmem [shape: f32[8,32], index: 0, kind: input, shape index: {}]   ;;  %s618_s1 = inlined_call_operand.vmem [shape: f32[8,128], index: 1, kind: input, shape index: {}]   ;;  %s619_s2 = inlined_call_operand.vmem [shape: f32[128,32], index: 2, kind: input, shape index: {}]   ;;  %s620_s3 = inlined_call_operand.vmem [shape: f32[32,128], index: 3, kind: input, shape index: {}]   ;;  %s621_s4 = inlined_call_operand.vmem [shape: f32[32,128], index: 4, kind: input, shape index: {}]   ;;  %s622_s5 = inlined_call_operand.hbm [shape: f32[8,128], index: 5, kind: output, shape index: {}]  }
   0x1   :  { %v29_v0 = vld [vmem:[%s618_s1] sm:$0xff]  ;;  %v38_v2 = vld [vmem:[%s619_s2 + $0x8] sm:$0xff]  ;;  %396 = vmatprep.subr.bf16.mxu0 %v466_v3  ;;  %v39_v5 = vld [vmem:[%s619_s2 + $0x10] sm:$0xff]  ;;  %371 = vmatprep.mubr.msk.f32.mxu0 %vm467_vm0, %v468_v7 }
   0x2   :  { %v37_v1 = vld [vmem:[%s619_s2] sm:$0xff]  ;;  %31 = vadd.xlane.f32.xlu0 %v29_v0  ;;  %v40_v6 = vld [vmem:[%s619_s2 + $0x18] sm:$0xff]  ;;  %420 = vmatprep.subr.bf16.mxu1 %v466_v3  ;;  %v42_v10 = vld [vmem:[%s619_s2 + $0x28] sm:$0xff] }
   0x3   :  { %v397_v4 = vpack.c.bf16 %v38_v2, %v37_v1  ;;  %v400_v8 = vpack.c.bf16 %v40_v6, %v39_v5  ;;  %382 = vmatprep.mubr.msk.f32.mxu1 %vm467_vm0, %v468_v7  ;;  %v41_v9 = vld [vmem:[%s619_s2 + $0x20] sm:$0xff] }
   0x5   :  { %398 = vmatpush3.bf16.msra.mxu0 %v397_v4 }
   0x6   :  { %399 = vmatprep.subr.bf16.mxu0 %v466_v3 }
   0x7   :  { %10 = vsyncpa [#allocation5], 0  ;;  %vm27_vm1 = vcmask 7168   ;;  %v403_v11 = vpack.c.bf16 %v42_v10, %v41_v9  ;;  %v43_v12 = vld [vmem:[%s619_s2 + $0x30] sm:$0xff]  ;;  %v44_v13 = vld [vmem:[%s619_s2 + $0x38] sm:$0xff]  ;;  %v469_v20 = vmov 0  }
   0x8   :  { %28 = vst.msk [vmem:[#allocation3] sm:$0xff] %vm27_vm1, %v468_v7  ;;  %v406_v14 = vpack.c.bf16 %v44_v13, %v43_v12  ;;  %v45_v15 = vld [vmem:[%s619_s2 + $0x40] sm:$0xff]  ;;  %v46_v16 = vld [vmem:[%s619_s2 + $0x48] sm:$0xff]  ;;  %v47_v18 = vld [vmem:[%s619_s2 + $0x50] sm:$0xff]  ;;  %439 = vset.pattern.permute.xlu0 %v469_v20  ;;  %vm25_vm2 = vcmask 261120   ;;  %s470_s16 = smov [#allocation4]  }
   0x9   :  { %401 = vmatpush3.bf16.msra.mxu0 %v400_v8  ;;  %v409_v17 = vpack.c.bf16 %v46_v16, %v45_v15  ;;  %v48_v19 = vld [vmem:[%s619_s2 + $0x58] sm:$0xff]  ;;  %v49_v22 = vld [vmem:[%s619_s2 + $0x60] sm:$0xff]  ;;  %v50_v23 = vld [vmem:[%s619_s2 + $0x68] sm:$0xff]  ;;  %26 = vst.msk [vmem:[#allocation2] sm:$0xff] %vm25_vm2, %v468_v7  ;;  %s302_s17 = sshll.u32 %s470_s16, 4  ;;  %s303_s17 = int_to_ptr.vmem [resolvable:$true] %s302_s17 }
   0xa   :  { %402 = vmatprep.subr.bf16.mxu0 %v466_v3  ;;  %v412_v21 = vpack.c.bf16 %v48_v19, %v47_v18  ;;  %v415_v24 = vpack.c.bf16 %v50_v23, %v49_v22  ;;  %v51_v25 = vld [vmem:[%s619_s2 + $0x70] sm:$0xff]  ;;  %v52_v26 = vld [vmem:[%s619_s2 + $0x78] sm:$0xff]  ;;  %v144_v33 = vld [vmem:[%s621_s4] sm:$0xff]  ;;  %p447_p1 = scmp.lt.s32.totalorder %s303_s17, %s303_s17 }
   0xb   :  { %v418_v27 = vpack.c.bf16 %v52_v26, %v51_v25  ;;  %v145_v34 = vld [vmem:[%s621_s4 + $0x8] sm:$0xff]  ;;  %v146_v35 = vld [vmem:[%s621_s4 + $0x10] sm:$0xff]  ;;  %v147_v37 = vld [vmem:[%s621_s4 + $0x18] sm:$0xff] }
   0xc   :  { %v421_v36 = vpack.c.bf16 %v145_v34, %v144_v33  ;;  %v424_v38 = vpack.c.bf16 %v147_v37, %v146_v35  ;;  %v140_v44 = vld [vmem:[%s620_s3] sm:$0xff]  ;;  %v141_v45 = vld [vmem:[%s620_s3 + $0x8] sm:$0xff]  ;;  %v142_v50 = vld [vmem:[%s620_s3 + $0x10] sm:$0xff] }
   0xd   :  { %404 = vmatpush3.bf16.msra.mxu0 %v403_v11  ;;  %v427_v48 = vpack.c.bf16 %v141_v45, %v140_v44  ;;  %v143_v51 = vld [vmem:[%s620_s3 + $0x18] sm:$0xff]  ;;  %v139_v53 = vld [vmem:[%s617_s0] sm:$0xff]  ;;  %s442_s3 = scalar_lea.vmem %s303_s17, 128 }
   0xe   :  { %405 = vmatprep.subr.bf16.mxu0 %v466_v3  ;;  %422 = vmatpush3.bf16.msra.mxu1 %v421_v36  ;;  %v430_v52 = vpack.c.bf16 %v143_v51, %v142_v50  ;;  %p443_p0 = scmp.ne.s32.totalorder %s303_s17, %s442_s3  ;;  %p448_p2 = scmp.lt.s32.totalorder %s442_s3, %s442_s3 }
   0xf   :  { %v30_v28 = vld [vmem:[#allocation3] sm:$0xff]  ;;  %423 = vmatprep.subr.bf16.mxu1 %v466_v3 }
  0x10   :  { %v36_v39 = vld [vmem:[#allocation2] sm:$0xff]  ;;  %p449_p3 = por %p448_p2, %p447_p1 }
  0x11   :  { %407 = vmatpush3.bf16.msra.mxu0 %v406_v14 }
  0x12   :  { %408 = vmatprep.subr.bf16.mxu0 %v466_v3  ;;  %425 = vmatpush3.bf16.msra.mxu1 %v424_v38  ;;  %p450_p4 = pnand %p449_p3, %p443_p0 }
  0x13   :  { %426 = vmatprep.subr.bf16.mxu1 %v466_v3 }
  0x15   :  { %410 = vmatpush3.bf16.msra.mxu0 %v409_v17 }
  0x16   :  { %411 = vmatprep.subr.bf16.mxu0 %v466_v3 }
  0x19   :  { %413 = vmatpush3.bf16.msra.mxu0 %v412_v21 }
  0x1a   :  { %414 = vmatprep.subr.bf16.mxu0 %v466_v3 }
  0x1d   :  { %416 = vmatpush3.bf16.msra.mxu0 %v415_v24 }
  0x1e   :  { %417 = vmatprep.subr.bf16.mxu0 %v466_v3 }
  0x21   :  { %419 = vmatpush3.bf16.msra.mxu0 %v418_v27 }
  0x24   :  { %372 = vmatmul.mubr.f32.vlgmr.msra.gmra.mrb[0].mxu0 %v29_v0 }
  0x8f   :  { %v32_v29 = vpop.xlane.xlu0 %31 }
  0x90   :  { %v33_v30 = vadd.f32 %v32_v29, %v30_v28 }
  0x92   :  { %35 = vst.msk [vmem:[#allocation3] sm:$0xff] %vm27_vm1, %v33_v30 }
  0x99   :  { %v129_v31 = vld [vmem:[#allocation3] sm:$0xff] }
  0x9a   :  { %v130_v32 = vmax.f32 %v129_v31, 1.0 }
  0x9c   :  { %134 = vperm.xlu0 %439, %v130_v32  }
  0xf7   :  { %v119_v40 = vpop.f32.mrb[0].mxu0 }
  0xf8   :  { %v123_v41 = vadd.f32 %v119_v40, %v36_v39  ;;  %v373_v42 = vpop.f32.mrb[1].mxu0 }
  0xfa   :  { %125 = vst.msk [vmem:[#allocation2] sm:$0xff] %vm25_vm2, %v123_v41 }
 0x101   :  { %v131_v46 = vld [vmem:[#allocation2] sm:$0xff] }
 0x11b   :  { %v135_v43 = vpop.permute.xlu0 %134 }
 0x11c   :  { %440 = vrcp.f32 %v135_v43 }
 0x126   :  { %v441_v47 = vpop.eup %440 }
 0x127   :  { %v138_v49 = vmul.f32 %v441_v47, %v131_v46 }
 0x129   :  { %383 = vmatmul.mubr.msk.f32.vlgmr.msra.gmra.mrb[0].mxu1 %vm25_vm2, %v138_v49 }
 0x12a   :  { %428 = vmatpush3.bf16.msra.mxu1 %v427_v48  ;;  %393 = vmatprep.mubr.msk.f32.mxu1 %vm467_vm0, %v468_v7 }
 0x12b   :  { %429 = vmatprep.subr.bf16.mxu1 %v466_v3 }
 0x12e   :  { %431 = vmatpush3.bf16.msra.mxu1 %v430_v52 }
 0x131   :  { %394 = vmatmul.mubr.msk.f32.vlgmr.msra.gmra.mrb[0].mxu1 %vm25_vm2, %v139_v53 }
 0x204   :  { %v290_v54 = vpop.f32.mrb[0].mxu1 }
 0x205   :  { %v294_v55 = vmax.f32 %v290_v54, 0.0  ;;  %v395_v56 = vpop.f32.mrb[1].mxu1 }
 0x207   :  { %295 = vst [vmem:[#allocation4] sm:$0xff] %v294_v55 }
 0x208   :  { %453 = shalt.err (!%p450_p4)
}
 0x209   :  { %s454_s0 = scalar_lea.hbm %s622_s5, 128 }
 0x20a   :  { %p455_p5 = scmp.ne.s32.totalorder %s622_s5, %s454_s0  ;;  %p458_p6 = scmp.lt.u32.totalorder %s454_s0, %s622_s5 }
 0x20c   :  { %p460_p7 = pnand %p458_p6, %p455_p5 }
 0x20e   :  { %463 = shalt.err (!%p460_p7)
}
 0x20f   :  { %305 = dma.vmem_to_hbm [thread:$0]  %s303_s17, 128, %s622_s5, [#allocation5]  }
 0x210   :  { %464 = dma.done.wait [#allocation5], 128  }
 0x211   :  { %465 = vsyncadd [#allocation5], 4294967168 }
 0x212   :  { %309 = vsyncpa [#allocation5], 1 }

</bundles_post_ra>
